<compile_context>
chip_gen: v7x
topology: tpu7x:2x2x1
jax: 0.10.0
libtpu: 0.0.40
codegen_flags: <defaults>
</compile_context>

<pallas_src>
import jax
import jax.numpy as jnp
from jax.experimental import pallas as pl
from jax.experimental.pallas import tpu as pltpu  # noqa: F401  (kept for parity with TPU-kernel conventions)

CHOMP_SIZE = 2  # TCN causal padding = (kernel_size - 1) * dilation = 2 in ODE04


def _chomp_kernel(x_ref, o_ref):
    # x_ref: (T_pad, L) tile, o_ref: (T_out, L) tile, L = B*C*N (lane axis).
    # Static leading-dim (sublane) slice -> straight vld/vst stream, no lane
    # masking, no gathers.
    o_ref[...] = x_ref[: o_ref.shape[0], :]


def chomp1d_pallas(x, chomp_size=CHOMP_SIZE):
    """x: (B, C, N, T_pad) -> (B, C, N, T_pad - chomp_size).

    Matches PyTorch Chomp1d.forward for chomp_size >= 1.
    """
    B, C, N, T_pad = x.shape
    assert 0 < chomp_size < T_pad, (chomp_size, T_pad)
    T_out = T_pad - chomp_size
    L = B * C * N

    # Lane-dense relayout: time on sublanes, flattened (B, C, N) on lanes.
    # For the example shape this is exactly (16, 128).
    xt = jnp.transpose(x, (3, 0, 1, 2)).reshape(T_pad, L)

    out_t = pl.pallas_call(
        _chomp_kernel,
        out_shape=jax.ShapeDtypeStruct((T_out, L), x.dtype),
        grid=(1,),  # single step: one input DMA, one output DMA
        in_specs=[
            # Block equals full array dims -> layout-legal for any T_pad / L.
            pl.BlockSpec((T_pad, L), lambda i: (0, 0)),
        ],
        out_specs=pl.BlockSpec((T_out, L), lambda i: (0, 0)),
        # No dimension_semantics / extra buffering: nothing to overlap at
        # this size.  For production C/N/T where the slab approaches VMEM
        # limits (esp. v7x's 64 MiB), add an L grid axis instead.
    )(xt)

    # Undo the relayout: (T_out, L) -> (B, C, N, T_out).
    return jnp.transpose(out_t.reshape(T_out, B, C, N), (1, 2, 3, 0))


if __name__ == "__main__":
    key = jax.random.PRNGKey(0)

    # Shapes consistent with Chomp1d's use inside the ODE04 temporal conv:
    # (batch, channels, num_nodes, time + causal_padding).
    B, C, N, T_PAD = 2, 4, 16, 16
    x = jax.random.normal(key, (B, C, N, T_PAD), jnp.float32)

    chomp = jax.jit(chomp1d_pallas, static_argnums=1)
    out = jax.block_until_ready(chomp(x, CHOMP_SIZE))

    # Pure-JAX reference: exact match expected (this is a copy).
    ref = x[:, :, :, :-CHOMP_SIZE]
    assert out.shape == (B, C, N, T_PAD - CHOMP_SIZE), out.shape
    assert bool(jnp.array_equal(out, ref)), float(jnp.max(jnp.abs(out - ref)))

    print("KERNEL_OK")
</pallas_src>

<mosaic_0001>
module attributes {stable_mosaic.version = 11 : i64} {
  func.func @_chomp_kernel(%arg0: i32, %arg1: memref<16x128xf32, #tpu.memory_space<vmem>>, %arg2: memref<14x128xf32, #tpu.memory_space<vmem>>) attributes {dimension_semantics = [#tpu.dimension_semantics<arbitrary>], iteration_bounds = array<i64: 1>, scalar_prefetch = 0 : i64, scratch_operands = 0 : i64, tpu.core_type = #tpu.core_type<tc>, window_params = [{pipeline_mode = #tpu.pipeline_mode<synchronous>, transform_indices = @transform_0, window_bounds = array<i64: 16, 128>}, {pipeline_mode = #tpu.pipeline_mode<synchronous>, transform_indices = @transform_1, window_bounds = array<i64: 14, 128>}]} {
    %c0 = arith.constant 0 : index
    %c0_0 = arith.constant 0 : index
    %0 = vector.load %arg1[%c0, %c0_0] : memref<16x128xf32, #tpu.memory_space<vmem>>, vector<14x128xf32>
    %c0_1 = arith.constant 0 : index
    %c0_2 = arith.constant 0 : index
    %1 = vector.load %arg2[%c0_1, %c0_2] : memref<14x128xf32, #tpu.memory_space<vmem>>, vector<14x128xf32>
    tpu.vector_store %arg2[%c0_1, %c0_2], %0 {strides = array<i32>} : memref<14x128xf32, #tpu.memory_space<vmem>>, vector<14x128xf32>,
    return
  }
  func.func @transform_0(%arg0: i32) -> (i32, i32) {
    %c0_i32 = arith.constant 0 : i32
    %c0_i32_0 = arith.constant 0 : i32
    %c0_i32_1 = arith.constant 0 : i32
    return %c0_i32, %c0_i32_0 : i32, i32
  }
  func.func @transform_1(%arg0: i32) -> (i32, i32) {
    %c0_i32 = arith.constant 0 : i32
    %c0_i32_0 = arith.constant 0 : i32
    %c0_i32_1 = arith.constant 0 : i32
    return %c0_i32, %c0_i32_0 : i32, i32
  }
}

</mosaic_0001>

<bundles_post_ra>
// kernel: chomp1d_pallas.1
= control target key start
LH: loop header
LB: loop body
LE: loop exit
PB: predicated region body
PF: predicated region fallthrough
CT: control target
= control target key end

     0   :  { %s38_s0 = inlined_call_operand.vmem [shape: f32[16,128], index: 0, kind: input, shape index: {}]   ;;  %s39_s1 = inlined_call_operand.vmem [shape: f32[14,128], index: 1, kind: output, shape index: {}]  }
   0x1   :  { %v8_v0 = vld [vmem:[%s38_s0] sm:$0xff]  ;;  %v9_v1 = vld [vmem:[%s38_s0 + $0x8] sm:$0x3f] }
   0x2   :  { %10 = vst [vmem:[%s39_s1] sm:$0xff] %v8_v0  ;;  %11 = vst [vmem:[%s39_s1 + $0x8] sm:$0x3f] %v9_v1 }

</bundles_post_ra>
